<compile_context>
chip_gen: v5e
topology: v5e:2x2
jax: 0.10.0
libtpu: 0.0.40
codegen_flags: <defaults>
</compile_context>

<pallas_src>
import functools

import jax
import jax.numpy as jnp
from jax.experimental import pallas as pl
from jax.experimental.pallas import tpu as pltpu


def _round_up(x: int, m: int) -> int:
    return ((x + m - 1) // m) * m


def _focal_ce_partial_kernel(logits_ref, target_ref, partial_ref, *,
                             n_rows: int, tile_n: int):
    # logits_ref: (TILE_N, C) native dtype, target_ref: (TILE_N, 1) int32,
    # partial_ref: (1, 1, 128) f32 -- per-tile partial sum of cross entropy.
    i = pl.program_id(0)

    logits = logits_ref[...].astype(jnp.float32)          # up-cast in-kernel (free VPU op)
    tgt = target_ref[...]                                  # (TILE_N, 1) int32
    tn, c = logits.shape

    # Gather the target logit via lane-index comparison + select (no one-hot multiply).
    col = jax.lax.broadcasted_iota(jnp.int32, (tn, c), 1)
    picked = jnp.sum(jnp.where(col == tgt, logits, 0.0), axis=-1, keepdims=True)  # (TILE_N, 1)

    # Numerically-stable log-sum-exp per row.
    m = jnp.max(logits, axis=-1, keepdims=True)
    lse = jnp.log(jnp.sum(jnp.exp(logits - m), axis=-1, keepdims=True)) + m       # (TILE_N, 1)
    ce = lse - picked                                                              # (TILE_N, 1)

    # Mask rows beyond the true batch size (last tile may be partial / padded).
    row = i * tile_n + jax.lax.broadcasted_iota(jnp.int32, (tn, 1), 0)
    ce = jnp.where(row < n_rows, ce, 0.0)

    # Lane-dense store of the tile's CE sum (splat across the 128 lanes).
    partial_ref[...] = jnp.broadcast_to(jnp.sum(ce), partial_ref.shape).astype(jnp.float32)


def focal_loss_pallas(logits: jax.Array, target: jax.Array, gamma: float = 0.0,
                      eps: float = 1e-7) -> jax.Array:
    # eps is declared by the PyTorch module but never used in its forward; kept for parity.
    del eps
    n, c = logits.shape
    target_2d = target.astype(jnp.int32).reshape(n, 1)

    # Tile budget: 2 (double-buffer) x TILE_N x C x itemsize <= ~8 MiB, so the
    # deepest tile still fits comfortably inside v7x's smaller VMEM.
    itemsize = jnp.dtype(logits.dtype).itemsize
    budget_bytes = 8 * 1024 * 1024
    tile_n = budget_bytes // (2 * max(1, c * itemsize))
    tile_n = max(8, min(512, (tile_n // 8) * 8))           # multiple of 8 sublanes
    tile_n = min(tile_n, _round_up(n, 8))                  # don't exceed (padded) batch
    num_tiles = pl.cdiv(n, tile_n)

    partials = pl.pallas_call(
        functools.partial(_focal_ce_partial_kernel, n_rows=n, tile_n=tile_n),
        grid=(num_tiles,),
        out_shape=jax.ShapeDtypeStruct((num_tiles, 1, 128), jnp.float32),
        in_specs=[
            pl.BlockSpec((tile_n, c), lambda i: (i, 0)),
            pl.BlockSpec((tile_n, 1), lambda i: (i, 0)),
        ],
        out_specs=pl.BlockSpec((1, 1, 128), lambda i: (i, 0, 0)),
        compiler_params=pltpu.CompilerParams(
            dimension_semantics=("parallel",),             # disjoint outputs -> megacore OK
            vmem_limit_bytes=32 * 1024 * 1024,
        ),
    )(logits, target_2d)

    # Finalize on scalars in plain JAX (reviewer-endorsed): mean CE + focal modulation.
    ce_sum = jnp.sum(partials[:, 0, 0])
    logp = ce_sum / jnp.float32(n)
    p = jnp.exp(-logp)
    one_minus_p = 1.0 - p
    g = float(gamma)
    if g >= 0.0 and g == int(g):
        mod = jnp.float32(1.0)
        for _ in range(int(g)):                            # repeated multiply for integer gamma
            mod = mod * one_minus_p
    else:
        mod = one_minus_p ** g
    return mod * logp


def focal_loss_ref(logits, target, gamma=0.0):
    # Pure-JAX reference for validation (matches the PyTorch module).
    logp_rows = jax.nn.log_softmax(logits.astype(jnp.float32), axis=-1)
    ce = -jnp.take_along_axis(logp_rows, target[:, None], axis=-1)[:, 0]
    logp = jnp.mean(ce)
    p = jnp.exp(-logp)
    return (1.0 - p) ** gamma * logp


if __name__ == "__main__":
    key = jax.random.PRNGKey(0)
    k_logits, k_target = jax.random.split(key)

    N, C = 8, 32                      # batch of 8, 32 classes
    gamma = 2.0

    logits = jax.random.normal(k_logits, (N, C), dtype=jnp.float32)
    target = jax.random.randint(k_target, (N,), 0, C, dtype=jnp.int32)

    loss = focal_loss_pallas(logits, target, gamma=gamma)
    loss = jax.block_until_ready(loss)

    ref = focal_loss_ref(logits, target, gamma=gamma)
    assert jnp.allclose(loss, ref, rtol=1e-5, atol=1e-6), (loss, ref)

    print("KERNEL_OK")
</pallas_src>

<mosaic_0001>
module attributes {stable_mosaic.version = 11 : i64} {
  func.func @_focal_ce_partial_kernel(%arg0: i32, %arg1: memref<8x32xf32, #tpu.memory_space<vmem>>, %arg2: memref<8x1xi32, #tpu.memory_space<vmem>>, %arg3: memref<1x1x128xf32, #tpu.memory_space<vmem>>) attributes {dimension_semantics = [#tpu.dimension_semantics<parallel>], iteration_bounds = array<i64: 1>, scalar_prefetch = 0 : i64, scratch_operands = 0 : i64, tpu.core_type = #tpu.core_type<tc>, window_params = [{transform_indices = @transform_0, window_bounds = array<i64: 8, 32>}, {transform_indices = @transform_1, window_bounds = array<i64: 8, 1>}, {transform_indices = @transform_2, window_bounds = array<i64: 1, 1, 128>}]} {
    %c0 = arith.constant 0 : index
    %c0_0 = arith.constant 0 : index
    %0 = vector.load %arg1[%c0, %c0_0] : memref<8x32xf32, #tpu.memory_space<vmem>>, vector<8x32xf32>
    %c0_1 = arith.constant 0 : index
    %c0_2 = arith.constant 0 : index
    %1 = vector.load %arg2[%c0_1, %c0_2] : memref<8x1xi32, #tpu.memory_space<vmem>>, vector<8x1xi32>
    %2 = tpu.iota {dimensions = array<i32: 1>} : vector<8x32xi32>
    %3 = vector.broadcast %1 : vector<8x1xi32> to vector<8x32xi32>
    %4 = arith.cmpi eq, %2, %3 : vector<8x32xi32>
    %cst = arith.constant 0.000000e+00 : f32
    %5 = vector.broadcast %cst : f32 to vector<8x32xf32>
    %6 = arith.select %4, %0, %5 : vector<8x32xi1>, vector<8x32xf32>
    %cst_3 = arith.constant dense<0.000000e+00> : vector<8xf32>
    %7 = vector.multi_reduction <add>, %6, %cst_3 [1] : vector<8x32xf32> to vector<8xf32>
    %8 = vector.shape_cast %7 : vector<8xf32> to vector<8x1xf32>
    %cst_4 = arith.constant dense<0xFF800000> : vector<8xf32>
    %9 = vector.multi_reduction <maximumf>, %0, %cst_4 [1] : vector<8x32xf32> to vector<8xf32>
    %10 = vector.shape_cast %9 : vector<8xf32> to vector<8x1xf32>
    %11 = vector.broadcast %10 : vector<8x1xf32> to vector<8x32xf32>
    %12 = arith.subf %0, %11 : vector<8x32xf32>
    %13 = math.exp %12 : vector<8x32xf32>
    %cst_5 = arith.constant dense<0.000000e+00> : vector<8xf32>
    %14 = vector.multi_reduction <add>, %13, %cst_5 [1] : vector<8x32xf32> to vector<8xf32>
    %15 = vector.shape_cast %14 : vector<8xf32> to vector<8x1xf32>
    %16 = math.log %15 : vector<8x1xf32>
    %17 = arith.addf %16, %10 : vector<8x1xf32>
    %18 = arith.subf %17, %8 : vector<8x1xf32>
    %c8_i32 = arith.constant 8 : i32
    %19 = arith.muli %arg0, %c8_i32 : i32
    %20 = tpu.iota {dimensions = array<i32: 0>} : vector<8x1xi32>
    %21 = vector.broadcast %19 : i32 to vector<8x1xi32>
    %22 = arith.addi %21, %20 : vector<8x1xi32>
    %c8_i32_6 = arith.constant 8 : i32
    %23 = vector.broadcast %c8_i32_6 : i32 to vector<8x1xi32>
    %24 = arith.cmpi slt, %22, %23 : vector<8x1xi32>
    %cst_7 = arith.constant 0.000000e+00 : f32
    %25 = vector.broadcast %cst_7 : f32 to vector<8x1xf32>
    %26 = arith.select %24, %18, %25 : vector<8x1xi1>, vector<8x1xf32>
    %27 = vector.shape_cast %26 : vector<8x1xf32> to vector<1x8x1xf32>
    %cst_8 = arith.constant dense<0.000000e+00> : vector<1xf32>
    %28 = vector.multi_reduction <add>, %27, %cst_8 [1, 2] : vector<1x8x1xf32> to vector<1xf32>
    %29 = vector.shape_cast %28 : vector<1xf32> to vector<1x1x1xf32>
    %30 = vector.extract %29[0, 0, 0] : f32 from vector<1x1x1xf32>
    %31 = vector.broadcast %30 : f32 to vector<1x1x128xf32>
    %c0_9 = arith.constant 0 : index
    %c0_10 = arith.constant 0 : index
    %c0_11 = arith.constant 0 : index
    %32 = vector.load %arg3[%c0_9, %c0_10, %c0_11] : memref<1x1x128xf32, #tpu.memory_space<vmem>>, vector<1x1x128xf32>
    tpu.vector_store %arg3[%c0_9, %c0_10, %c0_11], %31 {strides = array<i32>} : memref<1x1x128xf32, #tpu.memory_space<vmem>>, vector<1x1x128xf32>,
    return
  }
  func.func @transform_0(%arg0: i32) -> (i32, i32) {
    %c0_i32 = arith.constant 0 : i32
    %c0_i32_0 = arith.constant 0 : i32
    return %arg0, %c0_i32 : i32, i32
  }
  func.func @transform_1(%arg0: i32) -> (i32, i32) {
    %c0_i32 = arith.constant 0 : i32
    %c0_i32_0 = arith.constant 0 : i32
    return %arg0, %c0_i32 : i32, i32
  }
  func.func @transform_2(%arg0: i32) -> (i32, i32, i32) {
    %c0_i32 = arith.constant 0 : i32
    %c0_i32_0 = arith.constant 0 : i32
    %c0_i32_1 = arith.constant 0 : i32
    return %arg0, %c0_i32, %c0_i32_0 : i32, i32, i32
  }
}

</mosaic_0001>

<bundles_post_ra>
// kernel: tpu_custom_call.1
= control target key start
LH: loop header
LB: loop body
LE: loop exit
PB: predicated region body
PF: predicated region fallthrough
CT: control target
= control target key end

     0   :  { %vm21_vm0 = vcmask 261120   ;;  %s138_s0 = inlined_call_operand.vmem [shape: f32[8,32], index: 0, kind: input, shape index: {}]   ;;  %s139_s1 = inlined_call_operand.vmem [shape: s32[8,1], index: 1, kind: input, shape index: {}]   ;;  %s140_s2 = inlined_call_operand.hbm [shape: f32[1,1,128], index: 2, kind: output, shape index: {}]  }
   0x1   :  { %v12_v0 = vld [vmem:[%s138_s0] sm:$0xff] }
   0x2   :  { %7 = vsyncpa [#allocation3], 0  ;;  %v25_v1 = vsel %vm21_vm0, %v12_v0, -inf  ;;  %v109_v2 = vmov 0   ;;  %v13_v3 = vld [vmem:[%s139_s1] sm:$0xff]  ;;  %v14_v9 = vlaneseq  ;;  %vm45_vm2 = vcmask 7168  }
   0x3   :  { %78 = vset.pattern.permute.xlu0 %v109_v2  ;;  %s110_s0 = smov [#allocation2]   ;;  %s65_s15 = sshll.u32 %s140_s2, 4  ;;  %s66_s15 = int_to_ptr.hbm [resolvable:$true] %s65_s15 }
   0x4   :  { %26 = vmax.xlane.f32.xlu0 %v25_v1  ;;  %v15_v10 = vand.u32 127, %v14_v9  ;;  %s63_s1 = sshll.u32 %s110_s0, 4  ;;  %s64_s1 = int_to_ptr.vmem [resolvable:$true] %s63_s1 }
  0x18   :  { %17 = vperm.xlu0 %78, %v13_v3  }
  0x77   :  { %v27_v4 = vpop.xlane.xlu0 %26 }
  0x78   :  { %v28_v5 = vsub.f32 %v12_v0, %v27_v4 }
  0x7a   :  { %v29_v6 = vmul.f32 1.442695, %v28_v5 }
  0x7c   :  { %79 = vpow2.f32 %v29_v6 }
  0x82   :  { %v80_v7 = vpop.eup %79 }
  0x83   :  { %v31_v8 = vsel %vm21_vm0, %v80_v7, 0.0 }
  0x84   :  { %32 = vadd.xlane.f32.xlu1 %v31_v8 }
  0x8a   :  { %v18_v11 = vpop.permute.xlu0 %17 }
  0x8b   :  { %vm19_vm1 = vcmp.eq.s32.totalorder %v15_v10, %v18_v11 }
  0x8c   :  { %v20_v12 = vsel %vm19_vm1, %v12_v0, 0.0 }
  0x8d   :  { %v22_v13 = vsel %vm21_vm0, %v20_v12, 0.0 }
  0x8e   :  { %23 = vadd.xlane.f32.xlu1 %v22_v13 }
  0xf7   :  { %v33_v14 = vpop.xlane.xlu1 %32 }
  0xf8   :  { %81 = vlog2.f32 %v33_v14 }
  0xfe   :  { %v82_v15 = vpop.eup %81 }
  0xff   :  { %v35_v16 = vmul.f32 0.6931472, %v82_v15 }
 0x101   :  { %v36_v17 = vadd.f32 %v35_v16, %v27_v4  ;;  %v24_v18 = vpop.xlane.xlu1 %23 }
 0x103   :  { %v37_v19 = vsub.f32 %v36_v17, %v24_v18 }
 0x105   :  { %v46_v20 = vsel %vm45_vm2, %v37_v19, 0.0 }
 0x106   :  { %47 = vadd.xlane.f32.xlu2 %v46_v20 }
 0x179   :  { %v48_v21 = vpop.xlane.xlu2 %47 }
 0x17a   :  { %v49_v22 = vrot.slane %v48_v21, 4 }
 0x17c   :  { %v50_v23 = vadd.f32 %v49_v22, %v48_v21 }
 0x17e   :  { %v51_v24 = vrot.slane %v50_v23, 2 }
 0x180   :  { %v52_v25 = vadd.f32 %v51_v24, %v50_v23 }
 0x182   :  { %v53_v26 = vrot.slane %v52_v25, 1 }
 0x184   :  { %v54_v27 = vadd.f32 %v53_v26, %v52_v25 }
 0x186   :  { %74 = vpush %v54_v27 }
 0x1b7   :  { %s75_s16 = spop %74 }
 0x1b8   :  { %v56_v28 = vstv %s75_s16 }
 0x1b9   :  { %57 = vst [vmem:[#allocation2] sm:$0x1] %v56_v28 }
 0x1ba   :  { %68 = dma.vmem_to_hbm [thread:$0]  %s64_s1, 16, %s66_s15, [#allocation3]  }
 0x1bb   :  { %107 = dma.done.wait [#allocation3], 16  }
 0x1bc   :  { %108 = vsyncadd [#allocation3], 4294967280 }
 0x1bd   :  { %73 = vsyncpa [#allocation3], 1 }

</bundles_post_ra>
